<compile_context>
chip_gen: v6e
topology: v6e:2x2x1
jax: 0.10.0
libtpu: 0.0.40
codegen_flags: <defaults>
</compile_context>

<pallas_src>
import functools

import jax
import jax.numpy as jnp
from jax.experimental import pallas as pl
from jax.experimental.pallas import tpu as pltpu

LN_EPS = 1e-5  # torch.nn.LayerNorm default


def _normalize(h):
    # Single-pass LayerNorm over the feature (sublane) axis; affine is folded
    # into the following Linear.  var = E[x^2] - mu^2 so both reductions are
    # independent; clamp guards tiny negative values from cancellation.
    inv_n = 1.0 / h.shape[0]
    s1 = jnp.sum(h, axis=0, keepdims=True)
    s2 = jnp.sum(h * h, axis=0, keepdims=True)
    mu = s1 * inv_n
    var = jnp.maximum(s2 * inv_n - mu * mu, 0.0)
    return (h - mu) * jax.lax.rsqrt(var + LN_EPS)


def _softplus(x):
    # numerically stable softplus == torch.nn.Softplus(beta=1)
    return jnp.maximum(x, 0.0) + jnp.log1p(jnp.exp(-jnp.abs(x)))


def output_layer_kernel(
    x_ref,            # (TILE_B, D)  natural HBM layout, transposed in-kernel
    w0_ref, b0_ref,   # (D//2, D),   (D//2, 1)    LN affine folded in
    w1_ref, b1_ref,   # (D//4, D//2),(D//4, 1)
    w2_ref, b2_ref,   # (D//4, D//4),(D//4, 1)
    w3_ref,           # (D//4, 1)                 y_std folded in
    b3_ref,           # (1, 1) in SMEM            y_mean folded in
    out_ref,          # (1, TILE_B)
):
    # (TILE_B, D) -> (D, TILE_B): batch maps to the 128-wide lane axis so
    # LN / softplus run at full lane utilization.
    h = x_ref[...].T

    # block 0: LN(D) -> Linear(D, D//2) -> Softplus
    h = _normalize(h)
    h = jnp.dot(w0_ref[...], h, preferred_element_type=jnp.float32) + b0_ref[...]
    h = _softplus(h)

    # block 1: LN(D//2) -> Linear(D//2, D//4) -> Softplus
    h = _normalize(h)
    h = jnp.dot(w1_ref[...], h, preferred_element_type=jnp.float32) + b1_ref[...]
    h = _softplus(h)

    # block 2: LN(D//4) -> Linear(D//4, D//4) -> Softplus
    h = _normalize(h)
    h = jnp.dot(w2_ref[...], h, preferred_element_type=jnp.float32) + b2_ref[...]
    h = _softplus(h)

    # final block: LN(D//4) -> Linear(D//4, 1), frozen scaling folded in.
    # K=D//4, N=1 -> VPU multiply + sublane reduce instead of an MXU matmul.
    h = _normalize(h)
    out_ref[...] = jnp.sum(w3_ref[...] * h, axis=0, keepdims=True) + b3_ref[0, 0]


def _round_up(x, m):
    return ((x + m - 1) // m) * m


@functools.partial(jax.jit, static_argnames=("tile_b",))
def output_layer(x, kernel_params, *, tile_b=16384):
    """x: (B, D) float32.  kernel_params: folded weights from fold_params()."""
    B, D = x.shape

    # batch maps to lanes -> tile width must be a multiple of 128
    tile_b = max(128, _round_up(tile_b, 128))
    # guarantee >=2 grid steps whenever the (lane-aligned) batch allows it so
    # the "parallel" grid axis can be sharded across v7x's two TensorCores.
    b_al = _round_up(B, 128)
    tb = min(tile_b, max(128, _round_up(pl.cdiv(b_al, 2), 128)))
    n_blocks = pl.cdiv(B, tb)

    # contiguous HBM reads: block spans the full last (feature) dim
    x_spec = pl.BlockSpec((tb, D), lambda i: (i, 0))
    # lane-dense output slab, exact multiple of the tile -> unmasked stores
    out_spec = pl.BlockSpec((1, tb), lambda i: (0, i))

    *vmem_params, b3 = kernel_params
    # small weights stay resident in VMEM across the whole grid
    w_specs = [pl.BlockSpec(p.shape, lambda i: (0, 0)) for p in vmem_params]
    b3_spec = pl.BlockSpec(memory_space=pltpu.MemorySpace.SMEM)

    out = pl.pallas_call(
        output_layer_kernel,
        out_shape=jax.ShapeDtypeStruct((1, n_blocks * tb), jnp.float32),
        grid=(n_blocks,),
        in_specs=[x_spec] + w_specs + [b3_spec],
        out_specs=out_spec,
        compiler_params=pltpu.CompilerParams(
            dimension_semantics=("parallel",),
            vmem_limit_bytes=48 * 1024 * 1024,
        ),
    )(x, *vmem_params, b3)

    return out[0, :B].reshape(B, 1)


def init_raw_params(key, input_dim):
    """Per-layer (gamma, beta, W(out,in), b), PyTorch-like init.  LN affine is
    randomized slightly so the weight-folding path is actually exercised."""
    dims = [input_dim, input_dim // 2, input_dim // 4, input_dim // 4, 1]
    raw = []
    for i in range(4):
        in_d, out_d = dims[i], dims[i + 1]
        key, kw, kb, kg, kbe = jax.random.split(key, 5)
        bound = 1.0 / jnp.sqrt(in_d)
        gamma = 1.0 + 0.1 * jax.random.normal(kg, (in_d,), jnp.float32)
        beta = 0.1 * jax.random.normal(kbe, (in_d,), jnp.float32)
        W = jax.random.uniform(kw, (out_d, in_d), jnp.float32, -bound, bound)
        b = jax.random.uniform(kb, (out_d,), jnp.float32, -bound, bound)
        raw.append((gamma, beta, W, b))
    return raw


def fold_params(raw_params, y_mean, y_std):
    """Fold the LN affine into the following Linear and the frozen scaling
    Linear(1,1) (weight=y_std, bias=y_mean) into the last Linear.

      LN_out @ W.T + b = h_norm @ (gamma * W).T + (W @ beta + b)
    """
    folded = []
    n = len(raw_params)
    for i, (gamma, beta, W, b) in enumerate(raw_params):
        Wf = W * gamma[None, :]        # (out, in): per-input-column scale
        bf = W @ beta + b              # (out,)
        if i == n - 1:
            Wf = (Wf * y_std).reshape(-1, 1)   # (in, 1) for VPU mul + reduce
            bf = bf * y_std + y_mean
        folded.append(jnp.asarray(Wf, jnp.float32))
        folded.append(jnp.asarray(bf, jnp.float32).reshape(-1, 1))
    return folded


def reference(x, raw_params, y_mean, y_std):
    """Pure-JAX reference of the PyTorch forward (un-folded parameters)."""
    def ln(h, g, b):
        mu = jnp.mean(h, axis=-1, keepdims=True)
        var = jnp.mean((h - mu) ** 2, axis=-1, keepdims=True)
        return (h - mu) / jnp.sqrt(var + LN_EPS) * g + b

    h = x
    n = len(raw_params)
    for i, (gamma, beta, W, b) in enumerate(raw_params):
        h = ln(h, gamma, beta) @ W.T + b
        if i < n - 1:
            h = jax.nn.softplus(h)
    return h * y_std + y_mean


if __name__ == "__main__":
    input_dim = 32
    batch = 8
    y_mean, y_std = 1.5, 2.5

    key = jax.random.PRNGKey(0)
    kx, kp = jax.random.split(key)
    x = jax.random.normal(kx, (batch, input_dim), dtype=jnp.float32)

    raw_params = init_raw_params(kp, input_dim)
    kernel_params = fold_params(raw_params, y_mean, y_std)

    out = output_layer(x, kernel_params)
    out = jax.block_until_ready(out)

    ref = reference(x, raw_params, y_mean, y_std)
    assert out.shape == (batch, 1), out.shape
    assert jnp.allclose(out, ref, atol=1e-4, rtol=1e-4), (out, ref)

    print("KERNEL_OK")
</pallas_src>

<mosaic_0001>
module attributes {stable_mosaic.version = 11 : i64} {
  func.func @output_layer_kernel(%arg0: i32, %arg1: memref<128x32xf32, #tpu.memory_space<vmem>>, %arg2: memref<16x32xf32, #tpu.memory_space<vmem>>, %arg3: memref<16x1xf32, #tpu.memory_space<vmem>>, %arg4: memref<8x16xf32, #tpu.memory_space<vmem>>, %arg5: memref<8x1xf32, #tpu.memory_space<vmem>>, %arg6: memref<8x8xf32, #tpu.memory_space<vmem>>, %arg7: memref<8x1xf32, #tpu.memory_space<vmem>>, %arg8: memref<8x1xf32, #tpu.memory_space<vmem>>, %arg9: memref<1x1xf32, #tpu.memory_space<smem>>, %arg10: memref<1x128xf32, #tpu.memory_space<vmem>>) attributes {dimension_semantics = [#tpu.dimension_semantics<parallel>], iteration_bounds = array<i64: 1>, scalar_prefetch = 0 : i64, scratch_operands = 0 : i64, tpu.core_type = #tpu.core_type<tc>, window_params = [{transform_indices = @transform_0, window_bounds = array<i64: 128, 32>}, {pipeline_mode = #tpu.pipeline_mode<synchronous>, transform_indices = @transform_1, window_bounds = array<i64: 16, 32>}, {pipeline_mode = #tpu.pipeline_mode<synchronous>, transform_indices = @transform_2, window_bounds = array<i64: 16, 1>}, {pipeline_mode = #tpu.pipeline_mode<synchronous>, transform_indices = @transform_3, window_bounds = array<i64: 8, 16>}, {pipeline_mode = #tpu.pipeline_mode<synchronous>, transform_indices = @transform_4, window_bounds = array<i64: 8, 1>}, {pipeline_mode = #tpu.pipeline_mode<synchronous>, transform_indices = @transform_5, window_bounds = array<i64: 8, 8>}, {pipeline_mode = #tpu.pipeline_mode<synchronous>, transform_indices = @transform_6, window_bounds = array<i64: 8, 1>}, {pipeline_mode = #tpu.pipeline_mode<synchronous>, transform_indices = @transform_7, window_bounds = array<i64: 8, 1>}, {transform_indices = @transform_8, window_bounds = array<i64: 1, 1>}, {transform_indices = @transform_9, window_bounds = array<i64: 1, 128>}]} {
    %c0 = arith.constant 0 : index
    %c0_0 = arith.constant 0 : index
    %0 = vector.load %arg1[%c0, %c0_0] : memref<128x32xf32, #tpu.memory_space<vmem>>, vector<128x32xf32>
    %1 = tpu.transpose %0, [1, 0] : vector<128x32xf32> -> vector<32x128xf32>
    %cst = arith.constant dense<0.000000e+00> : vector<128xf32>
    %2 = vector.multi_reduction <add>, %1, %cst [0] : vector<32x128xf32> to vector<128xf32>
    %3 = vector.shape_cast %2 : vector<128xf32> to vector<1x128xf32>
    %4 = arith.mulf %1, %1 : vector<32x128xf32>
    %cst_1 = arith.constant dense<0.000000e+00> : vector<128xf32>
    %5 = vector.multi_reduction <add>, %4, %cst_1 [0] : vector<32x128xf32> to vector<128xf32>
    %6 = vector.shape_cast %5 : vector<128xf32> to vector<1x128xf32>
    %cst_2 = arith.constant 3.125000e-02 : f32
    %7 = vector.broadcast %cst_2 : f32 to vector<1x128xf32>
    %8 = arith.mulf %3, %7 : vector<1x128xf32>
    %cst_3 = arith.constant 3.125000e-02 : f32
    %9 = vector.broadcast %cst_3 : f32 to vector<1x128xf32>
    %10 = arith.mulf %6, %9 : vector<1x128xf32>
    %11 = arith.mulf %8, %8 : vector<1x128xf32>
    %12 = arith.subf %10, %11 : vector<1x128xf32>
    %cst_4 = arith.constant 0.000000e+00 : f32
    %13 = vector.broadcast %cst_4 : f32 to vector<1x128xf32>
    %14 = arith.maximumf %12, %13 : vector<1x128xf32>
    %15 = vector.broadcast %8 : vector<1x128xf32> to vector<32x128xf32>
    %16 = arith.subf %1, %15 : vector<32x128xf32>
    %cst_5 = arith.constant 9.99999974E-6 : f32
    %17 = vector.broadcast %cst_5 : f32 to vector<1x128xf32>
    %18 = arith.addf %14, %17 : vector<1x128xf32>
    %19 = math.rsqrt %18 : vector<1x128xf32>
    %20 = vector.broadcast %19 : vector<1x128xf32> to vector<32x128xf32>
    %21 = arith.mulf %16, %20 : vector<32x128xf32>
    %c0_6 = arith.constant 0 : index
    %c0_7 = arith.constant 0 : index
    %22 = vector.load %arg2[%c0_6, %c0_7] : memref<16x32xf32, #tpu.memory_space<vmem>>, vector<16x32xf32>
    %cst_8 = arith.constant dense<0.000000e+00> : vector<16x128xf32>
    %23 = tpu.matmul %22, %21, %cst_8 {dimension_numbers = #tpu.dot_dimension_numbers<[1], [0], [0], [1], [0, 0, 1, 1], [], []>} : vector<16x32xf32>, vector<32x128xf32>, vector<16x128xf32> -> vector<16x128xf32>
    %c0_9 = arith.constant 0 : index
    %c0_10 = arith.constant 0 : index
    %24 = vector.load %arg3[%c0_9, %c0_10] : memref<16x1xf32, #tpu.memory_space<vmem>>, vector<16x1xf32>
    %25 = vector.broadcast %24 : vector<16x1xf32> to vector<16x128xf32>
    %26 = arith.addf %23, %25 : vector<16x128xf32>
    %cst_11 = arith.constant 0.000000e+00 : f32
    %27 = vector.broadcast %cst_11 : f32 to vector<16x128xf32>
    %28 = arith.maximumf %26, %27 : vector<16x128xf32>
    %29 = math.absf %26 : vector<16x128xf32>
    %cst_12 = arith.constant 0.000000e+00 : f32
    %30 = vector.broadcast %cst_12 : f32 to vector<16x128xf32>
    %31 = arith.subf %30, %29 : vector<16x128xf32>
    %32 = math.exp %31 : vector<16x128xf32>
    %33 = math.log1p %32 : vector<16x128xf32>
    %34 = arith.addf %28, %33 : vector<16x128xf32>
    %cst_13 = arith.constant dense<0.000000e+00> : vector<128xf32>
    %35 = vector.multi_reduction <add>, %34, %cst_13 [0] : vector<16x128xf32> to vector<128xf32>
    %36 = vector.shape_cast %35 : vector<128xf32> to vector<1x128xf32>
    %37 = arith.mulf %34, %34 : vector<16x128xf32>
    %cst_14 = arith.constant dense<0.000000e+00> : vector<128xf32>
    %38 = vector.multi_reduction <add>, %37, %cst_14 [0] : vector<16x128xf32> to vector<128xf32>
    %39 = vector.shape_cast %38 : vector<128xf32> to vector<1x128xf32>
    %cst_15 = arith.constant 6.250000e-02 : f32
    %40 = vector.broadcast %cst_15 : f32 to vector<1x128xf32>
    %41 = arith.mulf %36, %40 : vector<1x128xf32>
    %cst_16 = arith.constant 6.250000e-02 : f32
    %42 = vector.broadcast %cst_16 : f32 to vector<1x128xf32>
    %43 = arith.mulf %39, %42 : vector<1x128xf32>
    %44 = arith.mulf %41, %41 : vector<1x128xf32>
    %45 = arith.subf %43, %44 : vector<1x128xf32>
    %cst_17 = arith.constant 0.000000e+00 : f32
    %46 = vector.broadcast %cst_17 : f32 to vector<1x128xf32>
    %47 = arith.maximumf %45, %46 : vector<1x128xf32>
    %48 = vector.broadcast %41 : vector<1x128xf32> to vector<16x128xf32>
    %49 = arith.subf %34, %48 : vector<16x128xf32>
    %cst_18 = arith.constant 9.99999974E-6 : f32
    %50 = vector.broadcast %cst_18 : f32 to vector<1x128xf32>
    %51 = arith.addf %47, %50 : vector<1x128xf32>
    %52 = math.rsqrt %51 : vector<1x128xf32>
    %53 = vector.broadcast %52 : vector<1x128xf32> to vector<16x128xf32>
    %54 = arith.mulf %49, %53 : vector<16x128xf32>
    %c0_19 = arith.constant 0 : index
    %c0_20 = arith.constant 0 : index
    %55 = vector.load %arg4[%c0_19, %c0_20] : memref<8x16xf32, #tpu.memory_space<vmem>>, vector<8x16xf32>
    %cst_21 = arith.constant dense<0.000000e+00> : vector<8x128xf32>
    %56 = tpu.matmul %55, %54, %cst_21 {dimension_numbers = #tpu.dot_dimension_numbers<[1], [0], [0], [1], [0, 0, 1, 1], [], []>} : vector<8x16xf32>, vector<16x128xf32>, vector<8x128xf32> -> vector<8x128xf32>
    %c0_22 = arith.constant 0 : index
    %c0_23 = arith.constant 0 : index
    %57 = vector.load %arg5[%c0_22, %c0_23] : memref<8x1xf32, #tpu.memory_space<vmem>>, vector<8x1xf32>
    %58 = vector.broadcast %57 : vector<8x1xf32> to vector<8x128xf32>
    %59 = arith.addf %56, %58 : vector<8x128xf32>
    %cst_24 = arith.constant 0.000000e+00 : f32
    %60 = vector.broadcast %cst_24 : f32 to vector<8x128xf32>
    %61 = arith.maximumf %59, %60 : vector<8x128xf32>
    %62 = math.absf %59 : vector<8x128xf32>
    %cst_25 = arith.constant 0.000000e+00 : f32
    %63 = vector.broadcast %cst_25 : f32 to vector<8x128xf32>
    %64 = arith.subf %63, %62 : vector<8x128xf32>
    %65 = math.exp %64 : vector<8x128xf32>
    %66 = math.log1p %65 : vector<8x128xf32>
    %67 = arith.addf %61, %66 : vector<8x128xf32>
    %cst_26 = arith.constant dense<0.000000e+00> : vector<128xf32>
    %68 = vector.multi_reduction <add>, %67, %cst_26 [0] : vector<8x128xf32> to vector<128xf32>
    %69 = vector.shape_cast %68 : vector<128xf32> to vector<1x128xf32>
    %70 = arith.mulf %67, %67 : vector<8x128xf32>
    %cst_27 = arith.constant dense<0.000000e+00> : vector<128xf32>
    %71 = vector.multi_reduction <add>, %70, %cst_27 [0] : vector<8x128xf32> to vector<128xf32>
    %72 = vector.shape_cast %71 : vector<128xf32> to vector<1x128xf32>
    %cst_28 = arith.constant 1.250000e-01 : f32
    %73 = vector.broadcast %cst_28 : f32 to vector<1x128xf32>
    %74 = arith.mulf %69, %73 : vector<1x128xf32>
    %cst_29 = arith.constant 1.250000e-01 : f32
    %75 = vector.broadcast %cst_29 : f32 to vector<1x128xf32>
    %76 = arith.mulf %72, %75 : vector<1x128xf32>
    %77 = arith.mulf %74, %74 : vector<1x128xf32>
    %78 = arith.subf %76, %77 : vector<1x128xf32>
    %cst_30 = arith.constant 0.000000e+00 : f32
    %79 = vector.broadcast %cst_30 : f32 to vector<1x128xf32>
    %80 = arith.maximumf %78, %79 : vector<1x128xf32>
    %81 = vector.broadcast %74 : vector<1x128xf32> to vector<8x128xf32>
    %82 = arith.subf %67, %81 : vector<8x128xf32>
    %cst_31 = arith.constant 9.99999974E-6 : f32
    %83 = vector.broadcast %cst_31 : f32 to vector<1x128xf32>
    %84 = arith.addf %80, %83 : vector<1x128xf32>
    %85 = math.rsqrt %84 : vector<1x128xf32>
    %86 = vector.broadcast %85 : vector<1x128xf32> to vector<8x128xf32>
    %87 = arith.mulf %82, %86 : vector<8x128xf32>
    %c0_32 = arith.constant 0 : index
    %c0_33 = arith.constant 0 : index
    %88 = vector.load %arg6[%c0_32, %c0_33] : memref<8x8xf32, #tpu.memory_space<vmem>>, vector<8x8xf32>
    %cst_34 = arith.constant dense<0.000000e+00> : vector<8x128xf32>
    %89 = tpu.matmul %88, %87, %cst_34 {dimension_numbers = #tpu.dot_dimension_numbers<[1], [0], [0], [1], [0, 0, 1, 1], [], []>} : vector<8x8xf32>, vector<8x128xf32>, vector<8x128xf32> -> vector<8x128xf32>
    %c0_35 = arith.constant 0 : index
    %c0_36 = arith.constant 0 : index
    %90 = vector.load %arg7[%c0_35, %c0_36] : memref<8x1xf32, #tpu.memory_space<vmem>>, vector<8x1xf32>
    %91 = vector.broadcast %90 : vector<8x1xf32> to vector<8x128xf32>
    %92 = arith.addf %89, %91 : vector<8x128xf32>
    %cst_37 = arith.constant 0.000000e+00 : f32
    %93 = vector.broadcast %cst_37 : f32 to vector<8x128xf32>
    %94 = arith.maximumf %92, %93 : vector<8x128xf32>
    %95 = math.absf %92 : vector<8x128xf32>
    %cst_38 = arith.constant 0.000000e+00 : f32
    %96 = vector.broadcast %cst_38 : f32 to vector<8x128xf32>
    %97 = arith.subf %96, %95 : vector<8x128xf32>
    %98 = math.exp %97 : vector<8x128xf32>
    %99 = math.log1p %98 : vector<8x128xf32>
    %100 = arith.addf %94, %99 : vector<8x128xf32>
    %cst_39 = arith.constant dense<0.000000e+00> : vector<128xf32>
    %101 = vector.multi_reduction <add>, %100, %cst_39 [0] : vector<8x128xf32> to vector<128xf32>
    %102 = vector.shape_cast %101 : vector<128xf32> to vector<1x128xf32>
    %103 = arith.mulf %100, %100 : vector<8x128xf32>
    %cst_40 = arith.constant dense<0.000000e+00> : vector<128xf32>
    %104 = vector.multi_reduction <add>, %103, %cst_40 [0] : vector<8x128xf32> to vector<128xf32>
    %105 = vector.shape_cast %104 : vector<128xf32> to vector<1x128xf32>
    %cst_41 = arith.constant 1.250000e-01 : f32
    %106 = vector.broadcast %cst_41 : f32 to vector<1x128xf32>
    %107 = arith.mulf %102, %106 : vector<1x128xf32>
    %cst_42 = arith.constant 1.250000e-01 : f32
    %108 = vector.broadcast %cst_42 : f32 to vector<1x128xf32>
    %109 = arith.mulf %105, %108 : vector<1x128xf32>
    %110 = arith.mulf %107, %107 : vector<1x128xf32>
    %111 = arith.subf %109, %110 : vector<1x128xf32>
    %cst_43 = arith.constant 0.000000e+00 : f32
    %112 = vector.broadcast %cst_43 : f32 to vector<1x128xf32>
    %113 = arith.maximumf %111, %112 : vector<1x128xf32>
    %114 = vector.broadcast %107 : vector<1x128xf32> to vector<8x128xf32>
    %115 = arith.subf %100, %114 : vector<8x128xf32>
    %cst_44 = arith.constant 9.99999974E-6 : f32
    %116 = vector.broadcast %cst_44 : f32 to vector<1x128xf32>
    %117 = arith.addf %113, %116 : vector<1x128xf32>
    %118 = math.rsqrt %117 : vector<1x128xf32>
    %119 = vector.broadcast %118 : vector<1x128xf32> to vector<8x128xf32>
    %120 = arith.mulf %115, %119 : vector<8x128xf32>
    %c0_45 = arith.constant 0 : index
    %c0_46 = arith.constant 0 : index
    %121 = vector.load %arg8[%c0_45, %c0_46] : memref<8x1xf32, #tpu.memory_space<vmem>>, vector<8x1xf32>
    %122 = vector.broadcast %121 : vector<8x1xf32> to vector<8x128xf32>
    %123 = arith.mulf %122, %120 : vector<8x128xf32>
    %cst_47 = arith.constant dense<0.000000e+00> : vector<128xf32>
    %124 = vector.multi_reduction <add>, %123, %cst_47 [0] : vector<8x128xf32> to vector<128xf32>
    %125 = vector.shape_cast %124 : vector<128xf32> to vector<1x128xf32>
    %c0_48 = arith.constant 0 : index
    %c0_49 = arith.constant 0 : index
    %126 = memref.load %arg9[%c0_48, %c0_49] : memref<1x1xf32, #tpu.memory_space<smem>>
    %127 = vector.broadcast %126 : f32 to vector<1x128xf32>
    %128 = arith.addf %125, %127 : vector<1x128xf32>
    %c0_50 = arith.constant 0 : index
    %c0_51 = arith.constant 0 : index
    %129 = vector.load %arg10[%c0_50, %c0_51] : memref<1x128xf32, #tpu.memory_space<vmem>>, vector<1x128xf32>
    tpu.vector_store %arg10[%c0_50, %c0_51], %128 {strides = array<i32>} : memref<1x128xf32, #tpu.memory_space<vmem>>, vector<1x128xf32>,
    return
  }
  func.func @transform_0(%arg0: i32) -> (i32, i32) {
    %c0_i32 = arith.constant 0 : i32
    %c0_i32_0 = arith.constant 0 : i32
    return %arg0, %c0_i32 : i32, i32
  }
  func.func @transform_1(%arg0: i32) -> (i32, i32) {
    %c0_i32 = arith.constant 0 : i32
    %c0_i32_0 = arith.constant 0 : i32
    %c0_i32_1 = arith.constant 0 : i32
    return %c0_i32, %c0_i32_0 : i32, i32
  }
  func.func @transform_2(%arg0: i32) -> (i32, i32) {
    %c0_i32 = arith.constant 0 : i32
    %c0_i32_0 = arith.constant 0 : i32
    %c0_i32_1 = arith.constant 0 : i32
    return %c0_i32, %c0_i32_0 : i32, i32
  }
  func.func @transform_3(%arg0: i32) -> (i32, i32) {
    %c0_i32 = arith.constant 0 : i32
    %c0_i32_0 = arith.constant 0 : i32
    %c0_i32_1 = arith.constant 0 : i32
    return %c0_i32, %c0_i32_0 : i32, i32
  }
  func.func @transform_4(%arg0: i32) -> (i32, i32) {
    %c0_i32 = arith.constant 0 : i32
    %c0_i32_0 = arith.constant 0 : i32
    %c0_i32_1 = arith.constant 0 : i32
    return %c0_i32, %c0_i32_0 : i32, i32
  }
  func.func @transform_5(%arg0: i32) -> (i32, i32) {
    %c0_i32 = arith.constant 0 : i32
    %c0_i32_0 = arith.constant 0 : i32
    %c0_i32_1 = arith.constant 0 : i32
    return %c0_i32, %c0_i32_0 : i32, i32
  }
  func.func @transform_6(%arg0: i32) -> (i32, i32) {
    %c0_i32 = arith.constant 0 : i32
    %c0_i32_0 = arith.constant 0 : i32
    %c0_i32_1 = arith.constant 0 : i32
    return %c0_i32, %c0_i32_0 : i32, i32
  }
  func.func @transform_7(%arg0: i32) -> (i32, i32) {
    %c0_i32 = arith.constant 0 : i32
    %c0_i32_0 = arith.constant 0 : i32
    %c0_i32_1 = arith.constant 0 : i32
    return %c0_i32, %c0_i32_0 : i32, i32
  }
  func.func @transform_8(%arg0: i32) -> (i32, i32) {
    %c0_i32 = arith.constant 0 : i32
    %c0_i32_0 = arith.constant 0 : i32
    %c0_i32_1 = arith.constant 0 : i32
    return %c0_i32, %c0_i32_0 : i32, i32
  }
  func.func @transform_9(%arg0: i32) -> (i32, i32) {
    %c0_i32 = arith.constant 0 : i32
    %c0_i32_0 = arith.constant 0 : i32
    return %c0_i32, %arg0 : i32, i32
  }
}

</mosaic_0001>

<bundles_post_ra>
// kernel: output_layer.1
= control target key start
LH: loop header
LB: loop body
LE: loop exit
PB: predicated region body
PF: predicated region fallthrough
CT: control target
= control target key end

     0   :  { %vm132_vm0 = vcmask 261120   ;;  %v595_v17 = vmov 0   ;;  %vm597_vm1 = vmmov 0   ;;  %vm278_vm4 = vcmask 130048   ;;  %s738_s0 = inlined_call_operand.vmem [shape: f32[8,32], index: 0, kind: input, shape index: {}]   ;;  %s739_s1 = inlined_call_operand.vmem [shape: f32[16,32], index: 1, kind: input, shape index: {}]   ;;  %s740_s2 = inlined_call_operand.vmem [shape: f32[16,1], index: 2, kind: input, shape index: {}]   ;;  %s741_s4 = inlined_call_operand.vmem [shape: f32[8,1], index: 4, kind: input, shape index: {}]   ;;  %s742_s6 = inlined_call_operand.vmem [shape: f32[8,1], index: 6, kind: input, shape index: {}]   ;;  %s743_s7 = inlined_call_operand.vmem [shape: f32[8,1], index: 7, kind: input, shape index: {}]   ;;  %s744_s3 = inlined_call_operand.vmem [shape: f32[8,16], index: 3, kind: input, shape index: {}]   ;;  %s745_s5 = inlined_call_operand.vmem [shape: f32[8,8], index: 5, kind: input, shape index: {}]   ;;  %s746_s8 = inlined_call_operand.<no memory space> [shape: f32[1,1], index: 8, kind: input, shape index: {}]   ;;  %s747_s9 = inlined_call_operand.vmem [shape: f32[1,128], index: 9, kind: output, shape index: {}]  }
   0x1   :  { %v33_v0 = vld [vmem:[%s738_s0] sm:$0xff]  ;;  %v34_v1 = vld [vmem:[%s738_s0 + $0x8] sm:$0xff]  ;;  %v35_v2 = vld [vmem:[%s738_s0 + $0x10] sm:$0xff]  ;;  %569 = vset.pattern.permute.xlu1 %v595_v17  ;;  %vm396_vm6 = vcmask 64512  }
   0x2   :  { %49 = vxpose.xlu0.b32.start [1/16] (narrow) %v33_v0, 32  ;;  %v36_v3 = vld [vmem:[%s738_s0 + $0x18] sm:$0xff]  ;;  %v37_v4 = vld [vmem:[%s738_s0 + $0x20] sm:$0xff]  ;;  %v38_v5 = vld [vmem:[%s738_s0 + $0x28] sm:$0xff] }
   0x3   :  { %v39_v6 = vld [vmem:[%s738_s0 + $0x30] sm:$0xff]  ;;  %v40_v7 = vld [vmem:[%s738_s0 + $0x38] sm:$0xff]  ;;  %v41_v8 = vld [vmem:[%s738_s0 + $0x40] sm:$0xff] }
   0x4   :  { %v42_v9 = vld [vmem:[%s738_s0 + $0x48] sm:$0xff]  ;;  %v43_v10 = vld [vmem:[%s738_s0 + $0x50] sm:$0xff]  ;;  %v44_v11 = vld [vmem:[%s738_s0 + $0x58] sm:$0xff] }
   0x5   :  { %v45_v12 = vld [vmem:[%s738_s0 + $0x60] sm:$0xff]  ;;  %v46_v13 = vld [vmem:[%s738_s0 + $0x68] sm:$0xff]  ;;  %v47_v14 = vld [vmem:[%s738_s0 + $0x70] sm:$0xff] }
   0x6   :  { %50 = vxpose.xlu0.b32.cont [2/16] (narrow) %v34_v1, 32  ;;  %v118_v15 = vld [vmem:[%s739_s1] sm:$0xff]  ;;  %v48_v16 = vld [vmem:[%s738_s0 + $0x78] sm:$0xff]  ;;  %v121_v19 = vld [vmem:[%s740_s2 + $0x8] sm:$0xff]  ;;  %v596_v1 = vmov 0.0  }
   0x7   :  { %551 = vmatprep.mubr.msk.f32.mxu0 %vm132_vm0, %v118_v15  ;;  %v120_v18 = vld [vmem:[%s740_s2] sm:$0xff]  ;;  %v119_v0 = vld [vmem:[%s739_s1 + $0x8] sm:$0xff]  ;;  %554 = vmatprep.subr.mxu1 %v596_v1 }
   0x8   :  { %124 = vperm.xlu1 %569, %v120_v18   ;;  %v272_v20 = vld [vmem:[%s741_s4] sm:$0xff]  ;;  %558 = vmatprep.mubr.msk.f32.mxu1 %vm597_vm1, %v596_v1 }
   0x9   :  { %v390_v21 = vld [vmem:[%s742_s6] sm:$0xff] }
   0xa   :  { %51 = vxpose.xlu0.b32.cont [3/16] (narrow) %v35_v2, 32  ;;  %v507_v22 = vld [vmem:[%s743_s7] sm:$0xff] }
   0xc   :  { %129 = vperm.xlu1 %569, %v121_v19  }
   0xe   :  { %52 = vxpose.xlu0.b32.cont [4/16] (narrow) %v36_v3, 32 }
  0x10   :  { %275 = vperm.xlu1 %569, %v272_v20  }
  0x12   :  { %53 = vxpose.xlu0.b32.cont [5/16] (narrow) %v37_v4, 32 }
  0x14   :  { %393 = vperm.xlu1 %569, %v390_v21  }
  0x16   :  { %54 = vxpose.xlu0.b32.cont [6/16] (narrow) %v38_v5, 32 }
  0x18   :  { %510 = vperm.xlu1 %569, %v507_v22  }
  0x1a   :  { %55 = vxpose.xlu0.b32.cont [7/16] (narrow) %v39_v6, 32 }
  0x1e   :  { %56 = vxpose.xlu0.b32.cont [8/16] (narrow) %v40_v7, 32 }
  0x22   :  { %57 = vxpose.xlu0.b32.cont [9/16] (narrow) %v41_v8, 32 }
  0x26   :  { %58 = vxpose.xlu0.b32.cont [10/16] (narrow) %v42_v9, 32 }
  0x2a   :  { %59 = vxpose.xlu0.b32.cont [11/16] (narrow) %v43_v10, 32 }
  0x2e   :  { %60 = vxpose.xlu0.b32.cont [12/16] (narrow) %v44_v11, 32 }
  0x32   :  { %61 = vxpose.xlu0.b32.cont [13/16] (narrow) %v45_v12, 32 }
  0x36   :  { %62 = vxpose.xlu0.b32.cont [14/16] (narrow) %v46_v13, 32 }
  0x3a   :  { %63 = vxpose.xlu0.b32.cont [15/16] (narrow) %v47_v14, 32 }
  0x3e   :  { %64 = vxpose.xlu0.b32.end [16/16] (narrow) %v48_v16, 32 }
  0x67   :  { %570 = vset.pattern.permute.xlu0 %v595_v17 }
  0x7e   :  { %v65_v23 = vpop.trf.xlu0 }
  0x7f   :  { %v90_v27 = vmul.f32 %v65_v23, %v65_v23 }
  0x82   :  { %v66_v24 = vpop.trf.xlu0 }
  0x83   :  { %v91_v25 = vmul.f32 %v66_v24, %v66_v24  ;;  %v81_v28 = vadd.f32 %v66_v24, %v65_v23  ;;  %v125_v2 = vpop.permute.xlu1 %124 }
  0x85   :  { %v94_v30 = vadd.f32 %v91_v25, %v90_v27 }
  0x86   :  { %v67_v26 = vpop.trf.xlu0 }
  0x87   :  { %v92_v29 = vmul.f32 %v67_v26, %v67_v26  ;;  %v82_v31 = vadd.f32 %v81_v28, %v67_v26  ;;  %v130_v3 = vpop.permute.xlu1 %129 }
  0x89   :  { %v95_v33 = vadd.f32 %v94_v30, %v92_v29 }
  0x8a   :  { %v68_v32 = vpop.trf.xlu0 }
  0x8b   :  { %v83_v34 = vadd.f32 %v82_v31, %v68_v32  ;;  %v93_v35 = vmul.f32 %v68_v32, %v68_v32 }
  0x8d   :  { %v84_v36 = vrot.slane %v83_v34, 4  ;;  %v96_v37 = vadd.f32 %v95_v33, %v93_v35 }
  0x8f   :  { %v85_v38 = vadd.f32 %v84_v36, %v83_v34  ;;  %v97_v39 = vrot.slane %v96_v37, 4 }
  0x91   :  { %v86_v40 = vrot.slane %v85_v38, 2  ;;  %v98_v41 = vadd.f32 %v97_v39, %v96_v37 }
  0x93   :  { %v87_v42 = vadd.f32 %v86_v40, %v85_v38  ;;  %v99_v43 = vrot.slane %v98_v41, 2 }
  0x95   :  { %v88_v44 = vrot.slane %v87_v42, 1  ;;  %v100_v45 = vadd.f32 %v99_v43, %v98_v41 }
  0x97   :  { %v89_v46 = vadd.f32 %v88_v44, %v87_v42  ;;  %v101_v47 = vrot.slane %v100_v45, 1 }
  0x99   :  { %v102_v48 = vadd.f32 %v101_v47, %v100_v45  ;;  %v103_v49 = vmul.f32 0.03125, %v89_v46 }
  0x9b   :  { %v104_v50 = vmul.f32 0.03125, %v102_v48  ;;  %v105_v51 = vmul.f32 %v103_v49, %v103_v49  ;;  %v111_v55 = vsub.f32 %v68_v32, %v103_v49  ;;  %v110_v58 = vsub.f32 %v67_v26, %v103_v49 }
  0x9c   :  { %v109_v60 = vsub.f32 %v66_v24, %v103_v49  ;;  %v108_v62 = vsub.f32 %v65_v23, %v103_v49 }
  0x9d   :  { %v106_v52 = vsub.f32 %v104_v50, %v105_v51 }
  0x9f   :  { %v107_v53 = vmax.f32 %v106_v52, 0.0 }
  0xa1   :  { %v112_v54 = vadd.f32 1e-05, %v107_v53 }
  0xa3   :  { %571 = vrsqrt.f32 %v112_v54 }
  0xb0   :  { %v572_v56 = vpop.eup %571 }
  0xb1   :  { %v117_v57 = vmul.f32 %v572_v56, %v111_v55  ;;  %v116_v59 = vmul.f32 %v572_v56, %v110_v58  ;;  %v115_v61 = vmul.f32 %v572_v56, %v109_v60  ;;  %v114_v63 = vmul.f32 %v572_v56, %v108_v62 }
  0xb3   :  { %543 = vmatprep.subr.mxu0 %v117_v57 }
  0xb4   :  { %544 = vmatpush3.msra.mxu0 %v117_v57 }
  0xb5   :  { %545 = vmatprep.subr.mxu0 %v116_v59 }
  0xb6   :  { %546 = vmatpush3.msra.mxu0 %v116_v59 }
  0xb7   :  { %547 = vmatprep.subr.mxu0 %v115_v61 }
  0xb8   :  { %548 = vmatpush3.msra.mxu0 %v115_v61 }
  0xb9   :  { %549 = vmatprep.subr.mxu0 %v114_v63 }
  0xba   :  { %550 = vmatpush3.msra.mxu0 %v114_v63  ;;  %v271_v63 = vld [vmem:[%s744_s3] sm:$0xff] }
  0xbb   :  { %552 = vmatmul.mubr.msk.f32.vlgmr.msra.gmra.mxu0 %vm132_vm0, %v119_v0  ;;  %v276_v0 = vpop.permute.xlu1 %275 }
 0x17b   :  { %v553_v4 = vpop.f32.mrf.mxu0 }
 0x17c   :  { %v211_v5 = vadd.f32 %v553_v4, %v130_v3 }
 0x17d   :  { %v205_v6 = vpop.f32.mrf.mxu0 }
 0x17e   :  { %v217_v7 = vand.u32 2147483647, %v211_v5  ;;  %v206_v8 = vadd.f32 %v205_v6, %v125_v2  ;;  %v215_v28 = vmax.f32 %v211_v5, 0.0 }
 0x180   :  { %v219_v9 = vsub.f32 0.0, %v217_v7  ;;  %v216_v10 = vand.u32 2147483647, %v206_v8  ;;  %v214_v33 = vmax.f32 %v206_v8, 0.0 }
 0x182   :  { %v222_v11 = vmul.f32 1.442695, %v219_v9  ;;  %v218_v12 = vsub.f32 0.0, %v216_v10 }
 0x184   :  { %573 = vpow2.f32 %v222_v11  ;;  %v220_v13 = vmul.f32 1.442695, %v218_v12 }
 0x186   :  { %575 = vpow2.f32 %v220_v13 }
 0x191   :  { %v574_v14 = vpop.eup %573 }
 0x192   :  { %v233_v15 = vadd.f32 1.0, %v574_v14  ;;  %v236_v18 = vmul.f32 -0.5, %v574_v14  ;;  %v239_v21 = vand.u32 2147483647, %v574_v14 }
 0x193   :  { %v576_v16 = vpop.eup %575 }
 0x194   :  { %577 = vlog2.f32 %v233_v15  ;;  %v224_v17 = vadd.f32 1.0, %v576_v16  ;;  %v227_v19 = vmul.f32 -0.5, %v576_v16  ;;  %v237_v20 = vadd.f32 1.0, %v236_v18 }
 0x195   :  { %v230_v24 = vand.u32 2147483647, %v576_v16  ;;  %vm240_vm2 = vcmp.lt.f32.partialorder %v239_v21, 0.0004427343 }
 0x196   :  { %579 = vlog2.f32 %v224_v17  ;;  %v228_v22 = vadd.f32 1.0, %v227_v19  ;;  %v238_v26 = vmul.f32 %v574_v14, %v237_v20 }
 0x197   :  { %vm231_vm3 = vcmp.lt.f32.partialorder %v230_v24, 0.0004427343 }
 0x198   :  { %v229_v31 = vmul.f32 %v576_v16, %v228_v22 }
 0x1a1   :  { %v578_v23 = vpop.eup %577 }
 0x1a2   :  { %v235_v25 = vmul.f32 0.6931472, %v578_v23 }
 0x1a3   :  { %v580_v27 = vpop.eup %579 }
 0x1a4   :  { %v241_v29 = vsel %vm240_vm2, %v238_v26, %v235_v25  ;;  %v226_v30 = vmul.f32 0.6931472, %v580_v27 }
 0x1a5   :  { %v243_v32 = vadd.f32 %v241_v29, %v215_v28 }
 0x1a6   :  { %v232_v34 = vsel %vm231_vm3, %v229_v31, %v226_v30 }
 0x1a7   :  { %v242_v35 = vadd.f32 %v232_v34, %v214_v33  ;;  %v252_v36 = vmul.f32 %v243_v32, %v243_v32 }
 0x1a9   :  { %v244_v37 = vadd.f32 %v243_v32, %v242_v35  ;;  %v251_v38 = vmul.f32 %v242_v35, %v242_v35 }
 0x1ab   :  { %v245_v39 = vrot.slane %v244_v37, 4  ;;  %v253_v40 = vadd.f32 %v252_v36, %v251_v38 }
 0x1ad   :  { %v246_v41 = vadd.f32 %v245_v39, %v244_v37  ;;  %v254_v42 = vrot.slane %v253_v40, 4 }
 0x1af   :  { %v255_v43 = vadd.f32 %v254_v42, %v253_v40  ;;  %v247_v44 = vrot.slane %v246_v41, 2  ;;  %v389_v40 = vld [vmem:[%s745_s5] sm:$0xff] }
 0x1b1   :  { %v256_v45 = vrot.slane %v255_v43, 2  ;;  %v248_v46 = vadd.f32 %v247_v44, %v246_v41  ;;  %v394_v41 = vpop.permute.xlu1 %393 }
 0x1b3   :  { %v257_v47 = vadd.f32 %v256_v45, %v255_v43  ;;  %v249_v48 = vrot.slane %v248_v46, 1 }
 0x1b5   :  { %v258_v49 = vrot.slane %v257_v47, 1  ;;  %v250_v50 = vadd.f32 %v249_v48, %v248_v46 }
 0x1b7   :  { %v259_v51 = vadd.f32 %v258_v49, %v257_v47  ;;  %v260_v52 = vmul.f32 0.0625, %v250_v50 }
 0x1b9   :  { %v261_v53 = vmul.f32 0.0625, %v259_v51  ;;  %v262_v54 = vmul.f32 %v260_v52, %v260_v52  ;;  %v266_v58 = vsub.f32 %v243_v32, %v260_v52  ;;  %v265_v61 = vsub.f32 %v242_v35, %v260_v52 }
 0x1bb   :  { %v263_v55 = vsub.f32 %v261_v53, %v262_v54 }
 0x1bd   :  { %v264_v56 = vmax.f32 %v263_v55, 0.0 }
 0x1bf   :  { %v267_v57 = vadd.f32 1e-05, %v264_v56 }
 0x1c1   :  { %581 = vrsqrt.f32 %v267_v57 }
 0x1ce   :  { %v582_v59 = vpop.eup %581 }
 0x1cf   :  { %v270_v60 = vmul.f32 %v582_v59, %v266_v58  ;;  %v269_v62 = vmul.f32 %v582_v59, %v265_v61 }
 0x1d1   :  { %555 = vmatpush3.msra.mxu1 %v270_v60 }
 0x1d2   :  { %556 = vmatprep.subr.mxu1 %v596_v1 }
 0x1d3   :  { %557 = vmatpush3.msra.mxu1 %v269_v62 }
 0x1d4   :  { %559 = vmatmul.mubr.msk.f32.vlgmr.msra.gmra.mxu1 %vm278_vm4, %v271_v63  ;;  %561 = vmatprep.subr.mxu1 %v596_v1 }
 0x1d5   :  { %563 = vmatprep.mubr.msk.f32.mxu1 %vm597_vm1, %v596_v1 }
 0x294   :  { %v348_v2 = vpop.f32.mrf.mxu1 }
 0x295   :  { %v349_v3 = vadd.f32 %v348_v2, %v276_v0 }
 0x296   :  { %v560_v4 = vpop.f32.mrf.mxu1 }
 0x297   :  { %v353_v5 = vand.u32 2147483647, %v349_v3  ;;  %v352_v16 = vmax.f32 %v349_v3, 0.0 }
 0x299   :  { %v354_v6 = vsub.f32 0.0, %v353_v5 }
 0x29b   :  { %v355_v7 = vmul.f32 1.442695, %v354_v6 }
 0x29d   :  { %583 = vpow2.f32 %v355_v7 }
 0x2aa   :  { %v584_v8 = vpop.eup %583 }
 0x2ab   :  { %v357_v9 = vadd.f32 1.0, %v584_v8  ;;  %v360_v10 = vmul.f32 -0.5, %v584_v8  ;;  %v363_v12 = vand.u32 2147483647, %v584_v8 }
 0x2ad   :  { %585 = vlog2.f32 %v357_v9  ;;  %v361_v11 = vadd.f32 1.0, %v360_v10  ;;  %vm364_vm5 = vcmp.lt.f32.partialorder %v363_v12, 0.0004427343 }
 0x2af   :  { %v362_v15 = vmul.f32 %v584_v8, %v361_v11 }
 0x2ba   :  { %v586_v13 = vpop.eup %585 }
 0x2bb   :  { %v359_v14 = vmul.f32 0.6931472, %v586_v13 }
 0x2bd   :  { %v365_v1 = vsel %vm364_vm5, %v362_v15, %v359_v14 }
 0x2be   :  { %v366_v17 = vadd.f32 %v365_v1, %v352_v16 }
 0x2c0   :  { %v367_v18 = vrot.slane %v366_v17, 4  ;;  %v373_v19 = vmul.f32 %v366_v17, %v366_v17 }
 0x2c2   :  { %v368_v20 = vadd.f32 %v367_v18, %v366_v17  ;;  %v374_v21 = vrot.slane %v373_v19, 4 }
 0x2c4   :  { %v369_v22 = vrot.slane %v368_v20, 2  ;;  %v375_v23 = vadd.f32 %v374_v21, %v373_v19 }
 0x2c6   :  { %v376_v24 = vrot.slane %v375_v23, 2  ;;  %v370_v25 = vadd.f32 %v369_v22, %v368_v20 }
 0x2c8   :  { %v377_v26 = vadd.f32 %v376_v24, %v375_v23  ;;  %v371_v27 = vrot.slane %v370_v25, 1  ;;  %v521_v24 = vstv %s746_s8 }
 0x2ca   :  { %v378_v28 = vrot.slane %v377_v26, 1  ;;  %v372_v29 = vadd.f32 %v371_v27, %v370_v25 }
 0x2cc   :  { %v379_v30 = vadd.f32 %v378_v28, %v377_v26  ;;  %v380_v31 = vmul.f32 0.125, %v372_v29 }
 0x2ce   :  { %v381_v32 = vmul.f32 0.125, %v379_v30  ;;  %v382_v33 = vmul.f32 %v380_v31, %v380_v31  ;;  %v385_v37 = vsub.f32 %v366_v17, %v380_v31  ;;  %v511_v17 = vpop.permute.xlu1 %510 }
 0x2d0   :  { %v383_v34 = vsub.f32 %v381_v32, %v382_v33 }
 0x2d2   :  { %v384_v35 = vmax.f32 %v383_v34, 0.0 }
 0x2d4   :  { %v386_v36 = vadd.f32 1e-05, %v384_v35 }
 0x2d6   :  { %587 = vrsqrt.f32 %v386_v36 }
 0x2e3   :  { %v588_v38 = vpop.eup %587 }
 0x2e4   :  { %v388_v39 = vmul.f32 %v588_v38, %v385_v37 }
 0x2e6   :  { %562 = vmatpush3.msra.mxu1 %v388_v39 }
 0x2e7   :  { %564 = vmatmul.mubr.msk.f32.vlgmr.msra.gmra.mxu1 %vm396_vm6, %v389_v40 }
 0x3a7   :  { %v466_v42 = vpop.f32.mrf.mxu1 }
 0x3a8   :  { %v467_v43 = vadd.f32 %v466_v42, %v394_v41 }
 0x3a9   :  { %v565_v44 = vpop.f32.mrf.mxu1 }
 0x3aa   :  { %v471_v45 = vand.u32 2147483647, %v467_v43  ;;  %v470_v56 = vmax.f32 %v467_v43, 0.0 }
 0x3ac   :  { %v472_v46 = vsub.f32 0.0, %v471_v45 }
 0x3ae   :  { %v473_v47 = vmul.f32 1.442695, %v472_v46 }
 0x3b0   :  { %589 = vpow2.f32 %v473_v47 }
 0x3bd   :  { %v590_v48 = vpop.eup %589 }
 0x3be   :  { %v475_v49 = vadd.f32 1.0, %v590_v48  ;;  %v478_v50 = vmul.f32 -0.5, %v590_v48  ;;  %v481_v52 = vand.u32 2147483647, %v590_v48 }
 0x3c0   :  { %591 = vlog2.f32 %v475_v49  ;;  %v479_v51 = vadd.f32 1.0, %v478_v50  ;;  %vm482_vm7 = vcmp.lt.f32.partialorder %v481_v52, 0.0004427343 }
 0x3c2   :  { %v480_v55 = vmul.f32 %v590_v48, %v479_v51 }
 0x3cd   :  { %v592_v53 = vpop.eup %591 }
 0x3ce   :  { %v477_v54 = vmul.f32 0.6931472, %v592_v53 }
 0x3d0   :  { %v483_v57 = vsel %vm482_vm7, %v480_v55, %v477_v54 }
 0x3d1   :  { %v484_v58 = vadd.f32 %v483_v57, %v470_v56 }
 0x3d3   :  { %v485_v59 = vrot.slane %v484_v58, 4  ;;  %v491_v60 = vmul.f32 %v484_v58, %v484_v58 }
 0x3d5   :  { %v486_v61 = vadd.f32 %v485_v59, %v484_v58  ;;  %v492_v62 = vrot.slane %v491_v60, 4 }
 0x3d7   :  { %v487_v63 = vrot.slane %v486_v61, 2  ;;  %v493_v0 = vadd.f32 %v492_v62, %v491_v60 }
 0x3d9   :  { %v488_v2 = vadd.f32 %v487_v63, %v486_v61  ;;  %v494_v3 = vrot.slane %v493_v0, 2 }
 0x3db   :  { %v489_v4 = vrot.slane %v488_v2, 1  ;;  %v495_v5 = vadd.f32 %v494_v3, %v493_v0 }
 0x3dd   :  { %v490_v6 = vadd.f32 %v489_v4, %v488_v2  ;;  %v496_v7 = vrot.slane %v495_v5, 1 }
 0x3df   :  { %v497_v8 = vadd.f32 %v496_v7, %v495_v5  ;;  %v498_v9 = vmul.f32 0.125, %v490_v6 }
 0x3e1   :  { %v499_v10 = vmul.f32 0.125, %v497_v8  ;;  %v500_v11 = vmul.f32 %v498_v9, %v498_v9  ;;  %v503_v15 = vsub.f32 %v484_v58, %v498_v9 }
 0x3e3   :  { %v501_v12 = vsub.f32 %v499_v10, %v500_v11 }
 0x3e5   :  { %v502_v13 = vmax.f32 %v501_v12, 0.0 }
 0x3e7   :  { %v504_v14 = vadd.f32 1e-05, %v502_v13 }
 0x3e9   :  { %593 = vrsqrt.f32 %v504_v14 }
 0x3f6   :  { %v594_v16 = vpop.eup %593 }
 0x3f7   :  { %v506_v1 = vmul.f32 %v594_v16, %v503_v15 }
 0x3f9   :  { %v513_v18 = vmul.f32 %v511_v17, %v506_v1 }
 0x3fb   :  { %v514_v19 = vrot.slane %v513_v18, 4 }
 0x3fd   :  { %v515_v20 = vadd.f32 %v514_v19, %v513_v18 }
 0x3ff   :  { %v516_v21 = vrot.slane %v515_v20, 2 }
 0x401   :  { %v517_v22 = vadd.f32 %v516_v21, %v515_v20 }
 0x403   :  { %v518_v23 = vrot.slane %v517_v22, 1 }
 0x405   :  { %v519_v25 = vadd.f32 %v518_v23, %v517_v22 }
 0x407   :  { %v522_v26 = vadd.f32 %v521_v24, %v519_v25 }
 0x409   :  { %523 = vst [vmem:[%s747_s9] sm:$0x1] %v522_v26 }

</bundles_post_ra>
